<compile_context>
chip_gen: v5e
topology: v5e:2x2
jax: 0.10.0
libtpu: 0.0.40
codegen_flags: <defaults>
</compile_context>

<pallas_src>
import functools

import jax
import jax.numpy as jnp
from jax.experimental import pallas as pl
from jax.experimental.pallas import tpu as pltpu


def _round_up(x, m):
    return -(-x // m) * m


# ----------------------------------------------------------------------------- kernels
def _gi_kernel_split(b0_ref, bi_ref, amega_ref, wmega_ref, out_ref, *, s_in, od):
    """Two bf16 MXU matmuls (K = N*D and K = S_in*D) + VPU epilogue.

    Used on 128-deep-MXU chips (<= v5e), where the two K-tiles already fill the MXU.
    """
    b0 = b0_ref[...].astype(jnp.bfloat16)                 # (TB, N*D)
    bi = bi_ref[...].astype(jnp.bfloat16)                 # (TB, S_in*D)
    c = jnp.dot(b0, amega_ref[...], preferred_element_type=jnp.float32)   # (TB, S_in*OD)
    v = jnp.dot(bi, wmega_ref[...], preferred_element_type=jnp.float32)   # (TB, S_in*OD)
    acc = c[:, :od] * v[:, :od]
    for s in range(1, s_in):                              # 128-lane aligned slices
        lo = s * od
        acc = acc + c[:, lo:lo + od] * v[:, lo:lo + od]
    out_ref[...] = acc.astype(out_ref.dtype)              # (TB, OD) lane-dense store


def _gi_kernel_packed(b0_ref, bi_ref, mmega_ref, out_ref, x_scr, *, s_in, od, k0, k1):
    """Single K-packed bf16 MXU matmul against block_diag(A_mega, W_mega).

    Used on 256-deep-MXU chips (v6e / v7x).  Both activation tiles are copied (as
    bf16) into one (TB, KP) VMEM scratch so the matmul runs as a single K<=256 pass.
    """
    kp = x_scr.shape[1]
    x_scr[:, :k0] = b0_ref[...].astype(jnp.bfloat16)                  # lanes [0, N*D)
    x_scr[:, k0:k0 + k1] = bi_ref[...].astype(jnp.bfloat16)           # lanes [N*D, N*D+S_in*D)
    if kp > k0 + k1:                                                   # zero the K padding lanes
        x_scr[:, k0 + k1:] = jnp.zeros((x_scr.shape[0], kp - (k0 + k1)), jnp.bfloat16)
    cv = jnp.dot(x_scr[...], mmega_ref[...],
                 preferred_element_type=jnp.float32)                   # (TB, 2*S_in*OD)
    sod = s_in * od
    c, v = cv[:, :sod], cv[:, sod:]
    acc = c[:, :od] * v[:, :od]
    for s in range(1, s_in):
        lo = s * od
        acc = acc + c[:, lo:lo + od] * v[:, lo:lo + od]
    out_ref[...] = acc.astype(out_ref.dtype)


# ----------------------------------------------------------------------------- tiling
def _pick_batch_tile(batch, per_sample_bytes, *, is_v7x):
    # Generation-aware VMEM budget: v7x has 64 MiB physical VMEM (vs 128 MiB on
    # v5e/v6e), so cap the batch tile lower there.
    budget = (20 << 20) if is_v7x else (40 << 20)
    max_tile = 2048 if is_v7x else 4096
    cap = min(max_tile, max(8, budget // max(per_sample_bytes, 1)))
    cap -= cap % 8
    if batch <= cap:
        # Small-batch fast path: one grid step, batch rounded up to 8 sublanes.
        tb = _round_up(batch, 8)
        if is_v7x and batch >= 256:
            # Split into (at least) 2 grid steps so the batch-parallel axis can
            # shard across both v7x TensorCores.
            tb = _round_up(-(-batch // 2), 8)
        return tb
    return cap          # batch > cap  ->  n_tiles >= 2 automatically


# ----------------------------------------------------------------------------- wrapper
def generalized_interaction(B_0, B_i, W, alpha, h, *, input_subspaces,
                            output_subspaces, num_fields, batch_tile=None, pack=None):
    batch, nf, D = B_0.shape
    S_in, S_out, N = input_subspaces, output_subspaces, num_fields
    assert nf == N
    assert B_i.shape == (batch, S_in, D)
    assert W.shape == (S_out, D, D)
    assert alpha.shape == (S_in * N, S_out)
    assert h.shape == (S_out, D, 1)
    OD = S_out * D
    SOD = S_in * OD
    K0, K1 = N * D, S_in * D
    out_dtype = B_0.dtype

    # ---- device-generation dispatch ----------------------------------------------
    try:
        kind = jax.devices()[0].device_kind.lower()
    except Exception:
        kind = ""
    is_v7x = "v7" in kind
    if pack is None:
        # 256-deep MXU (v6e / v7x): pack both matmuls into one K-pass.
        # 128-deep MXU (<= v5): keep the two separate K=128 / K=96 matmuls.
        pack = ("v6" in kind) or ("v7" in kind)

    # ---- fold the parameters once, in f32, then cast to bf16 ----------------------
    f32 = jnp.float32
    W_h = W.astype(f32) * jnp.transpose(h.astype(f32), (0, 2, 1))   # W_h[o,hh,d] = W[o,hh,d]*h[o,d]
    Wb = jnp.transpose(W_h, (2, 0, 1)).reshape(D, OD)               # Wb[d, o*D+hh]
    W_mega = jnp.kron(jnp.eye(S_in, dtype=f32), Wb)                 # (S_in*D, S_in*OD), block-diag over s
    alpha3 = alpha.astype(f32).reshape(S_in, N, S_out)              # alpha3[s,n,o] = alpha[s*N+n,o]
    A_mega = jnp.einsum('sno,hk->nhsok', alpha3,
                        jnp.eye(D, dtype=f32)).reshape(N * D, SOD)  # A[n*D+h, s*OD+o*D+h'] = d(h,h')*alpha

    # ---- lane-dense 2-D views of the batch inputs (free reshapes, no HBM replication)
    B0_2 = B_0.reshape(batch, K0)
    Bi_2 = B_i.reshape(batch, K1)

    # ---- batch tiling (VMEM-budgeted, generation-aware) ---------------------------
    lane_pad = lambda x: _round_up(x, 128)
    per_sample = (4 * 2 * (lane_pad(K0) + lane_pad(K1) + lane_pad(OD))   # double-buffered f32 I/O
                  + 4 * (2 * SOD + OD)                                   # c/v (or cv) + acc, f32
                  + 2 * lane_pad(K0 + K1))                               # bf16 operand copies / scratch
    if batch_tile is not None:
        tb = _round_up(max(1, min(batch_tile, batch)), 8)
    else:
        tb = _pick_batch_tile(batch, per_sample, is_v7x=is_v7x)
    n_tiles = pl.cdiv(batch, tb)
    pb = n_tiles * tb
    if pb != batch:
        B0_2 = jnp.pad(B0_2, ((0, pb - batch), (0, 0)))
        Bi_2 = jnp.pad(Bi_2, ((0, pb - batch), (0, 0)))

    cparams = pltpu.CompilerParams(
        dimension_semantics=("parallel",),
        vmem_limit_bytes=(48 if is_v7x else 64) * 1024 * 1024)

    if pack:
        # Single block-diagonal constant: rows [0,K0) = A_mega -> output cols [0,SOD),
        # rows [K0,K0+K1) = W_mega -> output cols [SOD,2*SOD).  K padded to 128 lanes.
        KP = _round_up(K0 + K1, 128)
        M_mega = jnp.zeros((KP, 2 * SOD), f32)
        M_mega = M_mega.at[:K0, :SOD].set(A_mega)
        M_mega = M_mega.at[K0:K0 + K1, SOD:].set(W_mega)
        M_mega = M_mega.astype(jnp.bfloat16)

        kernel = functools.partial(_gi_kernel_packed, s_in=S_in, od=OD, k0=K0, k1=K1)
        out_flat = pl.pallas_call(
            kernel,
            out_shape=jax.ShapeDtypeStruct((pb, OD), out_dtype),
            grid=(n_tiles,),
            in_specs=[
                pl.BlockSpec((tb, K0), lambda i: (i, 0)),        # B_0 (2-D view)
                pl.BlockSpec((tb, K1), lambda i: (i, 0)),        # B_i (2-D view)
                pl.BlockSpec((KP, 2 * SOD), lambda i: (0, 0)),   # block-diag constant (resident)
            ],
            out_specs=pl.BlockSpec((tb, OD), lambda i: (i, 0)),
            scratch_shapes=[pltpu.VMEM((tb, KP), jnp.bfloat16)],
            compiler_params=cparams,
        )(B0_2, Bi_2, M_mega)
    else:
        A_bf = A_mega.astype(jnp.bfloat16)
        W_bf = W_mega.astype(jnp.bfloat16)
        kernel = functools.partial(_gi_kernel_split, s_in=S_in, od=OD)
        out_flat = pl.pallas_call(
            kernel,
            out_shape=jax.ShapeDtypeStruct((pb, OD), out_dtype),
            grid=(n_tiles,),
            in_specs=[
                pl.BlockSpec((tb, K0), lambda i: (i, 0)),        # B_0 (2-D view)
                pl.BlockSpec((tb, K1), lambda i: (i, 0)),        # B_i (2-D view)
                pl.BlockSpec((K0, SOD), lambda i: (0, 0)),       # A_mega (resident)
                pl.BlockSpec((K1, SOD), lambda i: (0, 0)),       # W_mega (resident)
            ],
            out_specs=pl.BlockSpec((tb, OD), lambda i: (i, 0)),
            compiler_params=cparams,
        )(B0_2, Bi_2, A_bf, W_bf)

    return out_flat[:batch].reshape(batch, S_out, D)


# ----------------------------------------------------------------------------- reference
def reference(B_0, B_i, W, alpha, h, input_subspaces, num_fields):
    """Pure-JAX (f32) transliteration of the PyTorch forward."""
    B0_rep = jnp.tile(B_0, (1, input_subspaces, 1))
    Bi_rep = jnp.repeat(B_i, num_fields, axis=1)
    outer = jnp.einsum('bkh,bkd->bkhd', B0_rep, Bi_rep)
    fusion = jnp.einsum('bkhd,ko->bhdo', outer, alpha)
    fusion = W[None] * jnp.transpose(fusion, (0, 3, 1, 2))
    return jnp.einsum('bohd,od->boh', fusion, h[..., 0])


if __name__ == "__main__":
    input_subspaces = 3
    output_subspaces = 4
    num_fields = 4
    embedding_dim = 32
    batch = 20
    K = input_subspaces * num_fields

    key = jax.random.PRNGKey(0)
    k1, k2, k3, k4, k5 = jax.random.split(key, 5)
    B_0 = jax.random.normal(k1, (batch, num_fields, embedding_dim), jnp.float32)
    B_i = jax.random.normal(k2, (batch, input_subspaces, embedding_dim), jnp.float32)

    # Parameters per the module __init__ (W: eye, alpha/h: ones), plus a small
    # deterministic perturbation so the test exercises the full contraction.
    W = (jnp.tile(jnp.eye(embedding_dim, dtype=jnp.float32)[None],
                  (output_subspaces, 1, 1))
         + 0.01 * jax.random.normal(
             k3, (output_subspaces, embedding_dim, embedding_dim), jnp.float32))
    alpha = (jnp.ones((K, output_subspaces), jnp.float32)
             + 0.01 * jax.random.normal(k4, (K, output_subspaces), jnp.float32))
    h = (jnp.ones((output_subspaces, embedding_dim, 1), jnp.float32)
         + 0.01 * jax.random.normal(
             k5, (output_subspaces, embedding_dim, 1), jnp.float32))

    ref = reference(B_0, B_i, W, alpha, h, input_subspaces, num_fields)
    max_ref = float(jnp.max(jnp.abs(ref)))

    # Default path: generation-dispatched kernel, single-tile small-batch fast path.
    out = generalized_interaction(B_0, B_i, W, alpha, h,
                                  input_subspaces=input_subspaces,
                                  output_subspaces=output_subspaces,
                                  num_fields=num_fields)
    out = jax.block_until_ready(out)
    assert out.shape == (batch, output_subspaces, embedding_dim), out.shape
    # bf16 MXU operands -> relaxed (but still bug-catching) tolerances.
    max_err = float(jnp.max(jnp.abs(out - ref)))
    rel_err = float(jnp.linalg.norm(out - ref) / jnp.linalg.norm(ref))
    assert max_err <= 2.5e-2 * max_ref + 5e-2, (max_err, max_ref)
    assert rel_err < 2e-2, rel_err

    # Tiled + padded path: batch_tile=8 -> 3 grid steps, 4 padded rows.
    out_tiled = generalized_interaction(B_0, B_i, W, alpha, h,
                                        input_subspaces=input_subspaces,
                                        output_subspaces=output_subspaces,
                                        num_fields=num_fields, batch_tile=8)
    out_tiled = jax.block_until_ready(out_tiled)
    max_err_t = float(jnp.max(jnp.abs(out_tiled - ref)))
    assert max_err_t <= 2.5e-2 * max_ref + 5e-2, max_err_t

    print("KERNEL_OK")
</pallas_src>

<mosaic_0001>
module attributes {stable_mosaic.version = 11 : i64} {
  func.func @_gi_kernel_split(%arg0: i32, %arg1: memref<24x128xf32, #tpu.memory_space<vmem>>, %arg2: memref<24x96xf32, #tpu.memory_space<vmem>>, %arg3: memref<128x384xbf16, #tpu.memory_space<vmem>>, %arg4: memref<96x384xbf16, #tpu.memory_space<vmem>>, %arg5: memref<24x128xf32, #tpu.memory_space<vmem>>) attributes {dimension_semantics = [#tpu.dimension_semantics<parallel>], iteration_bounds = array<i64: 1>, scalar_prefetch = 0 : i64, scratch_operands = 0 : i64, tpu.core_type = #tpu.core_type<tc>, window_params = [{transform_indices = @transform_0, window_bounds = array<i64: 24, 128>}, {transform_indices = @transform_1, window_bounds = array<i64: 24, 96>}, {pipeline_mode = #tpu.pipeline_mode<synchronous>, transform_indices = @transform_2, window_bounds = array<i64: 128, 384>}, {pipeline_mode = #tpu.pipeline_mode<synchronous>, transform_indices = @transform_3, window_bounds = array<i64: 96, 384>}, {transform_indices = @transform_4, window_bounds = array<i64: 24, 128>}]} {
    %c0 = arith.constant 0 : index
    %c0_0 = arith.constant 0 : index
    %0 = vector.load %arg1[%c0, %c0_0] : memref<24x128xf32, #tpu.memory_space<vmem>>, vector<24x128xf32>
    %1 = arith.truncf %0 : vector<24x128xf32> to vector<24x128xbf16>
    %c0_1 = arith.constant 0 : index
    %c0_2 = arith.constant 0 : index
    %2 = vector.load %arg2[%c0_1, %c0_2] : memref<24x96xf32, #tpu.memory_space<vmem>>, vector<24x96xf32>
    %3 = arith.truncf %2 : vector<24x96xf32> to vector<24x96xbf16>
    %c0_3 = arith.constant 0 : index
    %c0_4 = arith.constant 0 : index
    %4 = vector.load %arg3[%c0_3, %c0_4] : memref<128x384xbf16, #tpu.memory_space<vmem>>, vector<128x384xbf16>
    %cst = arith.constant dense<0.000000e+00> : vector<24x384xf32>
    %5 = tpu.matmul %1, %4, %cst {dimension_numbers = #tpu.dot_dimension_numbers<[1], [0], [0], [1], [0, 0, 1, 1], [], []>} : vector<24x128xbf16>, vector<128x384xbf16>, vector<24x384xf32> -> vector<24x384xf32>
    %c0_5 = arith.constant 0 : index
    %c0_6 = arith.constant 0 : index
    %6 = vector.load %arg4[%c0_5, %c0_6] : memref<96x384xbf16, #tpu.memory_space<vmem>>, vector<96x384xbf16>
    %cst_7 = arith.constant dense<0.000000e+00> : vector<24x384xf32>
    %7 = tpu.matmul %3, %6, %cst_7 {dimension_numbers = #tpu.dot_dimension_numbers<[1], [0], [0], [1], [0, 0, 1, 1], [], []>} : vector<24x96xbf16>, vector<96x384xbf16>, vector<24x384xf32> -> vector<24x384xf32>
    %8 = vector.extract_strided_slice %5 {offsets = [0, 0], sizes = [24, 128], strides = [1, 1]} : vector<24x384xf32> to vector<24x128xf32>
    %9 = vector.extract_strided_slice %7 {offsets = [0, 0], sizes = [24, 128], strides = [1, 1]} : vector<24x384xf32> to vector<24x128xf32>
    %10 = arith.mulf %8, %9 : vector<24x128xf32>
    %11 = vector.extract_strided_slice %5 {offsets = [0, 128], sizes = [24, 128], strides = [1, 1]} : vector<24x384xf32> to vector<24x128xf32>
    %12 = vector.extract_strided_slice %7 {offsets = [0, 128], sizes = [24, 128], strides = [1, 1]} : vector<24x384xf32> to vector<24x128xf32>
    %13 = arith.mulf %11, %12 : vector<24x128xf32>
    %14 = arith.addf %10, %13 : vector<24x128xf32>
    %15 = vector.extract_strided_slice %5 {offsets = [0, 256], sizes = [24, 128], strides = [1, 1]} : vector<24x384xf32> to vector<24x128xf32>
    %16 = vector.extract_strided_slice %7 {offsets = [0, 256], sizes = [24, 128], strides = [1, 1]} : vector<24x384xf32> to vector<24x128xf32>
    %17 = arith.mulf %15, %16 : vector<24x128xf32>
    %18 = arith.addf %14, %17 : vector<24x128xf32>
    %c0_8 = arith.constant 0 : index
    %c0_9 = arith.constant 0 : index
    %19 = vector.load %arg5[%c0_8, %c0_9] : memref<24x128xf32, #tpu.memory_space<vmem>>, vector<24x128xf32>
    tpu.vector_store %arg5[%c0_8, %c0_9], %18 {strides = array<i32>} : memref<24x128xf32, #tpu.memory_space<vmem>>, vector<24x128xf32>,
    return
  }
  func.func @transform_0(%arg0: i32) -> (i32, i32) {
    %c0_i32 = arith.constant 0 : i32
    %c0_i32_0 = arith.constant 0 : i32
    return %arg0, %c0_i32 : i32, i32
  }
  func.func @transform_1(%arg0: i32) -> (i32, i32) {
    %c0_i32 = arith.constant 0 : i32
    %c0_i32_0 = arith.constant 0 : i32
    return %arg0, %c0_i32 : i32, i32
  }
  func.func @transform_2(%arg0: i32) -> (i32, i32) {
    %c0_i32 = arith.constant 0 : i32
    %c0_i32_0 = arith.constant 0 : i32
    %c0_i32_1 = arith.constant 0 : i32
    return %c0_i32, %c0_i32_0 : i32, i32
  }
  func.func @transform_3(%arg0: i32) -> (i32, i32) {
    %c0_i32 = arith.constant 0 : i32
    %c0_i32_0 = arith.constant 0 : i32
    %c0_i32_1 = arith.constant 0 : i32
    return %c0_i32, %c0_i32_0 : i32, i32
  }
  func.func @transform_4(%arg0: i32) -> (i32, i32) {
    %c0_i32 = arith.constant 0 : i32
    %c0_i32_0 = arith.constant 0 : i32
    return %arg0, %c0_i32 : i32, i32
  }
}

</mosaic_0001>

<bundles_post_ra>
// kernel: tpu_custom_call.1
= control target key start
LH: loop header
LB: loop body
LE: loop exit
PB: predicated region body
PF: predicated region fallthrough
CT: control target
= control target key end

     0   :  { %9 = vsyncpa [#allocation3], 0  ;;  %s960_s0 = inlined_call_operand.hbm [shape: f32[24,128], index: 0, kind: input, shape index: {}]   ;;  %s961_s1 = inlined_call_operand.hbm [shape: f32[24,96], index: 1, kind: input, shape index: {}]   ;;  %s962_s2 = inlined_call_operand.hbm [shape: bf16[128,384], index: 2, kind: input, shape index: {}]   ;;  %s963_s3 = inlined_call_operand.hbm [shape: bf16[96,384], index: 3, kind: input, shape index: {}]   ;;  %s964_s4 = inlined_call_operand.hbm [shape: f32[24,128], index: 4, kind: output, shape index: {}]  }
   0x1   :  { %10 = vsyncpa [#allocation6], 0 }
   0x2   :  { %11 = vsyncpa [#allocation9], 0 }
   0x3   :  { %12 = vsyncpa [#allocation4], 0  ;;  %s30_s17 = sshll.u32 %s961_s1, 4  ;;  %s891_s18 = smov [#allocation5]   ;;  %s31_s17 = int_to_ptr.hbm [resolvable:$true] %s30_s17 }
   0x4   :  { %s32_s19 = sshll.u32 %s891_s18, 4  ;;  %s17_s22 = sshll.u32 %s960_s0, 4  ;;  %s33_s19 = int_to_ptr.vmem [resolvable:$true] %s32_s19  ;;  %s18_s22 = int_to_ptr.hbm [resolvable:$true] %s17_s22 }
   0x5   :  { %s892_s23 = smov 128   ;;  %s893_s24 = smov 8  }
   0x6   :  { %38 = dma.hbm_to_vmem [thread:$0]  %s31_s17, 384, %s33_s19, [#allocation6], %s892_s23, %s892_s23, %s893_s24  }
   0x7   :  { %s894_s25 = smov [#allocation2]   ;;  %s43_s1 = sshll.u32 %s962_s2, 4  ;;  %s44_s1 = int_to_ptr.hbm [resolvable:$true] %s43_s1 }
   0x8   :  { %s19_s26 = sshll.u32 %s894_s25, 4  ;;  %s895_s0 = smov [#allocation7]   ;;  %s20_s26 = int_to_ptr.vmem [resolvable:$true] %s19_s26 }
   0x9   :  { %25 = dma.hbm_to_vmem [thread:$0]  %s18_s22, 384, %s20_s26, [#allocation3], %s892_s23, %s892_s23, %s893_s24  }
   0xa   :  { %s45_s29 = sshll.u32 %s895_s0, 4  ;;  %s56_s6 = sshll.u32 %s963_s3, 4  ;;  %s46_s29 = int_to_ptr.vmem [resolvable:$true] %s45_s29  ;;  %s57_s6 = int_to_ptr.hbm [resolvable:$true] %s56_s6 }
   0xb   :  { %s896_s7 = smov 192   ;;  %s897_s8 = smov 12  }
   0xc   :  { %51 = dma.hbm_to_vmem [thread:$0]  %s44_s1, 3072, %s46_s29, [#allocation6], %s896_s7, %s896_s7, %s897_s8  }
   0xd   :  { %s898_s9 = smov [#allocation8]  }
   0xe   :  { %s58_s10 = sshll.u32 %s898_s9, 4  ;;  %s59_s10 = int_to_ptr.vmem [resolvable:$true] %s58_s10 }
   0xf   :  { %64 = dma.hbm_to_vmem [thread:$0]  %s57_s6, 2304, %s59_s10, [#allocation9], %s896_s7, %s896_s7, %s897_s8  }
  0x10   :  { %883 = dma.done.wait [#allocation3], 384  }
  0x11   :  { %884 = vsyncadd [#allocation3], 4294966912 }
  0x12   :  { %885 = dma.done.wait [#allocation6], 3456  }
  0x13   :  { %886 = vsyncadd [#allocation6], 4294963840 }
  0x14   :  { %887 = dma.done.wait [#allocation9], 2304  }
  0x15   :  { %888 = vsyncadd [#allocation9], 4294964992  ;;  %v612_v0 = vld [vmem:[#allocation7 + $0xa8] sm:$0xf]  ;;  %v722_v1 = vld [vmem:[#allocation7 + $0xb0] sm:$0xf0] }
  0x16   :  { %v721_v2 = vld [vmem:[#allocation7 + $0xac] sm:$0xf]  ;;  %v613_v3 = vor.u32 %v722_v1, %v612_v0  ;;  %v614_v4 = vld [vmem:[#allocation7 + $0xb4] sm:$0xf0]  ;;  %v620_v5 = vld [vmem:[#allocation7 + $0xb0] sm:$0xf] }
  0x17   :  { %v723_v6 = vld [vmem:[#allocation7 + $0xb8] sm:$0xf0]  ;;  %v617_v7 = vor.u32 %v721_v2, %v614_v4  ;;  %v684_v9 = vld [vmem:[#allocation8 + $0x78] sm:$0xf]  ;;  %v740_v10 = vld [vmem:[#allocation8 + $0x80] sm:$0xf0] }
  0x18   :  { %v621_v8 = vor.u32 %v723_v6, %v620_v5  ;;  %v600_v11 = vld [vmem:[#allocation7 + $0x90] sm:$0xf]  ;;  %252 = vmatpush.bf16.msra.mxu0 %v613_v3  ;;  %v685_v12 = vor.u32 %v740_v10, %v684_v9  ;;  %v719_v13 = vld [vmem:[#allocation7 + $0x98] sm:$0xf0]  ;;  %v718_v14 = vld [vmem:[#allocation7 + $0x94] sm:$0xf] }
  0x19   :  { %v602_v15 = vld [vmem:[#allocation7 + $0x9c] sm:$0xf0]  ;;  %270 = vmatpush.bf16.msra.mxu1 %v617_v7  ;;  %v601_v16 = vor.u32 %v719_v13, %v600_v11  ;;  %v608_v18 = vld [vmem:[#allocation7 + $0x98] sm:$0xf]  ;;  %v720_v19 = vld [vmem:[#allocation7 + $0xa0] sm:$0xf0] }
  0x1a   :  { %288 = vmatpush.bf16.msra.mxu2 %v621_v8  ;;  %v605_v17 = vor.u32 %v718_v14, %v602_v15  ;;  %v672_v20 = vld [vmem:[#allocation8 + $0x60] sm:$0xf]  ;;  %435 = vmatpush.bf16.msra.mxu3 %v685_v12  ;;  %v609_v21 = vor.u32 %v720_v19, %v608_v18  ;;  %v737_v22 = vld [vmem:[#allocation8 + $0x68] sm:$0xf0]  ;;  %v588_v23 = vld [vmem:[#allocation7 + $0x78] sm:$0xf] }
  0x1b   :  { %v716_v24 = vld [vmem:[#allocation7 + $0x80] sm:$0xf0]  ;;  %v673_v25 = vor.u32 %v737_v22, %v672_v20  ;;  %v715_v26 = vld [vmem:[#allocation7 + $0x7c] sm:$0xf]  ;;  %v590_v27 = vld [vmem:[#allocation7 + $0x84] sm:$0xf0] }
  0x1c   :  { %v596_v28 = vld [vmem:[#allocation7 + $0x80] sm:$0xf]  ;;  %253 = vmatpush.bf16.msra.mxu0 %v601_v16  ;;  %v589_v29 = vor.u32 %v716_v24, %v588_v23  ;;  %v717_v30 = vld [vmem:[#allocation7 + $0x88] sm:$0xf0]  ;;  %v660_v31 = vld [vmem:[#allocation8 + $0x48] sm:$0xf]  ;;  %v593_v33 = vor.u32 %v715_v26, %v590_v27 }
  0x1d   :  { %v734_v32 = vld [vmem:[#allocation8 + $0x50] sm:$0xf0]  ;;  %271 = vmatpush.bf16.msra.mxu1 %v605_v17  ;;  %v597_v34 = vor.u32 %v717_v30, %v596_v28  ;;  %v576_v35 = vld [vmem:[#allocation7 + $0x60] sm:$0xf]  ;;  %v713_v36 = vld [vmem:[#allocation7 + $0x68] sm:$0xf0] }
  0x1e   :  { %289 = vmatpush.bf16.msra.mxu2 %v609_v21  ;;  %v712_v37 = vld [vmem:[#allocation7 + $0x64] sm:$0xf]  ;;  %436 = vmatpush.bf16.msra.mxu3 %v673_v25  ;;  %v661_v38 = vor.u32 %v734_v32, %v660_v31  ;;  %v578_v39 = vld [vmem:[#allocation7 + $0x6c] sm:$0xf0]  ;;  %v584_v40 = vld [vmem:[#allocation7 + $0x68] sm:$0xf]  ;;  %v577_v44 = vor.u32 %v713_v36, %v576_v35 }
  0x1f   :  { %v714_v41 = vld [vmem:[#allocation7 + $0x70] sm:$0xf0]  ;;  %v648_v42 = vld [vmem:[#allocation8 + $0x30] sm:$0xf]  ;;  %v731_v43 = vld [vmem:[#allocation8 + $0x38] sm:$0xf0]  ;;  %v581_v45 = vor.u32 %v712_v37, %v578_v39 }
  0x20   :  { %254 = vmatpush.bf16.msra.mxu0 %v589_v29  ;;  %v585_v46 = vor.u32 %v714_v41, %v584_v40  ;;  %v564_v47 = vld [vmem:[#allocation7 + $0x48] sm:$0xf]  ;;  %v710_v48 = vld [vmem:[#allocation7 + $0x50] sm:$0xf0]  ;;  %v709_v49 = vld [vmem:[#allocation7 + $0x4c] sm:$0xf]  ;;  %v649_v50 = vor.u32 %v731_v43, %v648_v42 }
  0x21   :  { %272 = vmatpush.bf16.msra.mxu1 %v593_v33  ;;  %v566_v51 = vld [vmem:[#allocation7 + $0x54] sm:$0xf0]  ;;  %v572_v52 = vld [vmem:[#allocation7 + $0x50] sm:$0xf]  ;;  %v711_v53 = vld [vmem:[#allocation7 + $0x58] sm:$0xf0]  ;;  %v565_v56 = vor.u32 %v710_v48, %v564_v47 }
  0x22   :  { %290 = vmatpush.bf16.msra.mxu2 %v597_v34  ;;  %437 = vmatpush.bf16.msra.mxu3 %v661_v38  ;;  %v636_v54 = vld [vmem:[#allocation8 + $0x18] sm:$0xf]  ;;  %v728_v55 = vld [vmem:[#allocation8 + $0x20] sm:$0xf0]  ;;  %v569_v57 = vor.u32 %v709_v49, %v566_v51  ;;  %v573_v58 = vor.u32 %v711_v53, %v572_v52  ;;  %v552_v59 = vld [vmem:[#allocation7 + $0x30] sm:$0xf] }
  0x23   :  { %v707_v60 = vld [vmem:[#allocation7 + $0x38] sm:$0xf0]  ;;  %v706_v61 = vld [vmem:[#allocation7 + $0x34] sm:$0xf]  ;;  %v637_v62 = vor.u32 %v728_v55, %v636_v54  ;;  %v554_v63 = vld [vmem:[#allocation7 + $0x3c] sm:$0xf0] }
  0x24   :  { %255 = vmatpush.bf16.msra.mxu0 %v577_v44  ;;  %v560_v0 = vld [vmem:[#allocation7 + $0x38] sm:$0xf]  ;;  %v708_v1 = vld [vmem:[#allocation7 + $0x40] sm:$0xf0]  ;;  %v624_v2 = vld [vmem:[#allocation8] sm:$0xf]  ;;  %v553_v4 = vor.u32 %v707_v60, %v552_v59  ;;  %v557_v7 = vor.u32 %v706_v61, %v554_v63 }
  0x25   :  { %273 = vmatpush.bf16.msra.mxu1 %v581_v45  ;;  %v725_v3 = vld [vmem:[#allocation8 + $0x8] sm:$0xf0]  ;;  %v88_v6 = vld [vmem:[#allocation5 + $0x8] sm:$0xff]  ;;  %v561_v8 = vor.u32 %v708_v1, %v560_v0  ;;  %v540_v9 = vld [vmem:[#allocation7 + $0x18] sm:$0xf]  ;;  %vm426_vm0 = vcmask 785408  }
  0x26   :  { %291 = vmatpush.bf16.msra.mxu2 %v585_v46  ;;  %438 = vmatpush.bf16.msra.mxu3 %v649_v50  ;;  %v87_v5 = vld [vmem:[#allocation5] sm:$0xff]  ;;  %v704_v10 = vld [vmem:[#allocation7 + $0x20] sm:$0xf0]  ;;  %v703_v11 = vld [vmem:[#allocation7 + $0x1c] sm:$0xf]  ;;  %v625_v12 = vor.u32 %v725_v3, %v624_v2  ;;  %s899_s2 = smov [#allocation10]  }
  0x27   :  { %v542_v13 = vld [vmem:[#allocation7 + $0x24] sm:$0xf0]  ;;  %v739_v14 = vld [vmem:[#allocation8 + $0x7c] sm:$0xf]  ;;  %v548_v16 = vld [vmem:[#allocation7 + $0x20] sm:$0xf]  ;;  %v541_v19 = vor.u32 %v704_v10, %v540_v9  ;;  %v943_v22 = vpack.c.bf16 %v88_v6, %v87_v5 }
  0x28   :  { %256 = vmatpush.bf16.msra.mxu0 %v565_v56  ;;  %v686_v15 = vld [vmem:[#allocation8 + $0x84] sm:$0xf0]  ;;  %v705_v17 = vld [vmem:[#allocation7 + $0x28] sm:$0xf0]  ;;  %v736_v20 = vld [vmem:[#allocation8 + $0x64] sm:$0xf]  ;;  %v545_v23 = vor.u32 %v703_v11, %v542_v13 }
  0x29   :  { %274 = vmatpush.bf16.msra.mxu1 %v569_v57  ;;  %v689_v18 = vor.u32 %v739_v14, %v686_v15  ;;  %v674_v21 = vld [vmem:[#allocation8 + $0x6c] sm:$0xf0]  ;;  %v528_v24 = vld [vmem:[#allocation7] sm:$0xf]  ;;  %v701_v25 = vld [vmem:[#allocation7 + $0x8] sm:$0xf0]  ;;  %v549_v27 = vor.u32 %v705_v17, %v548_v16 }
  0x2a   :  { %292 = vmatpush.bf16.msra.mxu2 %v573_v58  ;;  %439 = vmatpush.bf16.msra.mxu3 %v637_v62  ;;  %v700_v26 = vld [vmem:[#allocation7 + $0x4] sm:$0xf]  ;;  %v530_v28 = vld [vmem:[#allocation7 + $0xc] sm:$0xf0]  ;;  %v692_v29 = vld [vmem:[#allocation8 + $0x80] sm:$0xf]  ;;  %v677_v33 = vor.u32 %v736_v20, %v674_v21  ;;  %v529_v34 = vor.u32 %v701_v25, %v528_v24 }
  0x2b   :  { %v741_v30 = vld [vmem:[#allocation8 + $0x88] sm:$0xf0]  ;;  %v536_v31 = vld [vmem:[#allocation7 + $0x8] sm:$0xf]  ;;  %v702_v32 = vld [vmem:[#allocation7 + $0x10] sm:$0xf0]  ;;  %v533_v37 = vor.u32 %v700_v26, %v530_v28 }
  0x2c   :  { %257 = vmatpush.bf16.msra.mxu0 %v553_v4  ;;  %v82_v35 = vld [vmem:[#allocation2] sm:$0xff]  ;;  %v83_v36 = vld [vmem:[#allocation2 + $0x8] sm:$0xff]  ;;  %v693_v38 = vor.u32 %v741_v30, %v692_v29  ;;  %v733_v39 = vld [vmem:[#allocation8 + $0x4c] sm:$0xf]  ;;  %v537_v41 = vor.u32 %v702_v32, %v536_v31  ;;  %s509_s3 = sshll.u32 %s899_s2, 4  ;;  %s511_s13 = sshll.u32 %s964_s4, 4  ;;  %s510_s3 = int_to_ptr.vmem [resolvable:$true] %s509_s3  ;;  %s512_s13 = int_to_ptr.hbm [resolvable:$true] %s511_s13 }
  0x2d   :  { %275 = vmatpush.bf16.msra.mxu1 %v557_v7  ;;  %v662_v40 = vld [vmem:[#allocation8 + $0x54] sm:$0xf0]  ;;  %v680_v42 = vld [vmem:[#allocation8 + $0x68] sm:$0xf]  ;;  %v738_v43 = vld [vmem:[#allocation8 + $0x70] sm:$0xf0]  ;;  %v85_v44 = vpack.c.bf16 %v83_v36, %v82_v35 }
  0x2e   :  { %293 = vmatpush.bf16.msra.mxu2 %v561_v8  ;;  %440 = vmatpush.bf16.msra.mxu3 %v625_v12  ;;  %v665_v45 = vor.u32 %v733_v39, %v662_v40  ;;  %v730_v46 = vld [vmem:[#allocation8 + $0x34] sm:$0xf]  ;;  %v650_v47 = vld [vmem:[#allocation8 + $0x3c] sm:$0xf0]  ;;  %v681_v48 = vor.u32 %v738_v43, %v680_v42  ;;  %v668_v49 = vld [vmem:[#allocation8 + $0x50] sm:$0xf] }
  0x2f   :  { %v735_v50 = vld [vmem:[#allocation8 + $0x58] sm:$0xf0]  ;;  %v653_v51 = vor.u32 %v730_v46, %v650_v47  ;;  %v638_v53 = vld [vmem:[#allocation8 + $0x24] sm:$0xf0]  ;;  %v656_v56 = vld [vmem:[#allocation8 + $0x38] sm:$0xf] }
  0x30   :  { %258 = vmatpush.bf16.msra.mxu0 %v541_v19  ;;  %v727_v52 = vld [vmem:[#allocation8 + $0x1c] sm:$0xf]  ;;  %v669_v54 = vor.u32 %v735_v50, %v668_v49  ;;  %v732_v57 = vld [vmem:[#allocation8 + $0x40] sm:$0xf0]  ;;  %v626_v61 = vld [vmem:[#allocation8 + $0xc] sm:$0xf0] }
  0x31   :  { %694 = vmatmul.msk.bf16.vlgmr.msra.gmra.mxu3 %vm426_vm0, %v943_v22  ;;  %276 = vmatpush.bf16.msra.mxu1 %v545_v23  ;;  %v89_v55 = vld [vmem:[#allocation5 + $0x10] sm:$0xff]  ;;  %v641_v58 = vor.u32 %v727_v52, %v638_v53  ;;  %v724_v60 = vld [vmem:[#allocation8 + $0x4] sm:$0xf]  ;;  %v657_v62 = vor.u32 %v732_v57, %v656_v56  ;;  %v644_v63 = vld [vmem:[#allocation8 + $0x20] sm:$0xf] }
  0x32   :  { %742 = vmatpush.bf16.msrb.mxu3 %v689_v18  ;;  %294 = vmatpush.bf16.msra.mxu2 %v549_v27  ;;  %v91_v59 = vpack.c.bf16 %v89_v55, %v89_v55  ;;  %v729_v0 = vld [vmem:[#allocation8 + $0x28] sm:$0xf0]  ;;  %v84_v1 = vld [vmem:[#allocation2 + $0x10] sm:$0xff]  ;;  %v629_v2 = vor.u32 %v724_v60, %v626_v61  ;;  %v632_v4 = vld [vmem:[#allocation8 + $0x8] sm:$0xf] }
  0x33   :  { %v645_v3 = vor.u32 %v729_v0, %v644_v63  ;;  %v726_v5 = vld [vmem:[#allocation8 + $0x10] sm:$0xf0]  ;;  %v86_v6 = vpack.c.bf16 %v84_v1, %v84_v1 }
  0x34   :  { %259 = vmatpush.bf16.msra.mxu0 %v529_v34  ;;  %v633_v7 = vor.u32 %v726_v5, %v632_v4 }
  0x35   :  { %277 = vmatpush.bf16.msra.mxu1 %v533_v37 }
  0x36   :  { %743 = vmatpush.bf16.msrb.mxu3 %v677_v33  ;;  %295 = vmatpush.bf16.msra.mxu2 %v537_v41 }
  0x37   :  { %260 = vmatmul.bf16.vlgmr.msra.gmra.mxu0 %v85_v44 }
  0x38   :  { %471 = vmatpush.bf16.msrb.mxu0 %v693_v38  ;;  %278 = vmatmul.bf16.vlgmr.msra.gmra.mxu1 %v85_v44 }
  0x39   :  { %748 = vmatpush.bf16.msrb.mxu1 %v693_v38  ;;  %296 = vmatmul.bf16.vlgmr.msra.gmra.mxu2 %v85_v44 }
  0x3a   :  { %453 = vmatpush.bf16.msrb.mxu2 %v689_v18  ;;  %744 = vmatpush.bf16.msrb.mxu3 %v665_v45 }
  0x3c   :  { %472 = vmatpush.bf16.msrb.mxu0 %v681_v48 }
  0x3d   :  { %749 = vmatpush.bf16.msrb.mxu1 %v681_v48 }
  0x3e   :  { %454 = vmatpush.bf16.msrb.mxu2 %v677_v33  ;;  %745 = vmatpush.bf16.msrb.mxu3 %v653_v51 }
  0x40   :  { %473 = vmatpush.bf16.msrb.mxu0 %v669_v54 }
  0x41   :  { %750 = vmatpush.bf16.msrb.mxu1 %v669_v54  ;;  %695 = vmatmul.msk.bf16.gmra.mxu3 %vm426_vm0, %v91_v59 }
  0x42   :  { %455 = vmatpush.bf16.msrb.mxu2 %v665_v45  ;;  %746 = vmatpush.bf16.msrb.mxu3 %v641_v58 }
  0x44   :  { %474 = vmatpush.bf16.msrb.mxu0 %v657_v62 }
  0x45   :  { %751 = vmatpush.bf16.msrb.mxu1 %v657_v62 }
  0x46   :  { %456 = vmatpush.bf16.msrb.mxu2 %v653_v51  ;;  %747 = vmatpush.bf16.msrb.mxu3 %v629_v2 }
  0x47   :  { %265 = vmatmul.bf16.gmra.mxu0 %v86_v6 }
  0x48   :  { %475 = vmatpush.bf16.msrb.mxu0 %v645_v3  ;;  %283 = vmatmul.bf16.gmra.mxu1 %v86_v6 }
  0x49   :  { %752 = vmatpush.bf16.msrb.mxu1 %v645_v3  ;;  %301 = vmatmul.bf16.gmra.mxu2 %v86_v6 }
  0x4a   :  { %457 = vmatpush.bf16.msrb.mxu2 %v641_v58 }
  0x4c   :  { %476 = vmatpush.bf16.msrb.mxu0 %v633_v7 }
  0x4d   :  { %753 = vmatpush.bf16.msrb.mxu1 %v633_v7 }
  0x4e   :  { %458 = vmatpush.bf16.msrb.mxu2 %v629_v2 }
  0x51   :  { %697 = vmatmul.msk.bf16.vlgmr.msrb.gmra.mxu3 %vm426_vm0, %v91_v59 }
  0x57   :  { %698 = vmatmul.msk.bf16.vlgmr.msrb.gmra.mxu0 %vm426_vm0, %v943_v22 }
  0x58   :  { %699 = vmatmul.msk.bf16.vlgmr.msrb.gmra.mxu1 %vm426_vm0, %v91_v59 }
  0x59   :  { %696 = vmatmul.msk.bf16.vlgmr.msrb.gmra.mxu2 %vm426_vm0, %v943_v22 }
  0xb4   :  { %v442_v8 = vpop.f32.mrf.mxu3  ;;  %v261_v9 = vpop.f32.mrf.mxu0 }
  0xb5   :  { %v279_v10 = vpop.f32.mrf.mxu1  ;;  %v487_v34 = vmul.f32 %v442_v8, %v261_v9 }
  0xbc   :  { %v297_v11 = vpop.f32.mrf.mxu2  ;;  %v444_v12 = vpop.f32.mrf.mxu3 }
  0xbd   :  { %v263_v13 = vpop.f32.mrf.mxu0  ;;  %v281_v14 = vpop.f32.mrf.mxu1 }
  0xbe   :  { %v488_v42 = vmul.f32 %v444_v12, %v263_v13 }
  0xc4   :  { %v299_v15 = vpop.f32.mrf.mxu2  ;;  %v447_v16 = vpop.f32.mrf.mxu3 }
  0xc5   :  { %v266_v17 = vpop.f32.mrf.mxu0  ;;  %v284_v18 = vpop.f32.mrf.mxu1 }
  0xc6   :  { %v489_v26 = vmul.f32 %v447_v16, %v266_v17 }
  0xcc   :  { %v302_v19 = vpop.f32.mrf.mxu2  ;;  %v449_v20 = vpop.f32.mrf.mxu3 }
  0xcd   :  { %v268_v21 = vpop.f32.mrf.mxu0  ;;  %v286_v23 = vpop.f32.mrf.mxu1 }
  0xd4   :  { %v304_v24 = vpop.f32.mrf.mxu2  ;;  %v465_v25 = vpop.f32.mrf.mxu3 }
  0xd5   :  { %v492_v27 = vmul.f32 %v465_v25, %v284_v18  ;;  %v483_v22 = vpop.f32.mrf.mxu1  ;;  %v478_v31 = vpop.f32.mrf.mxu0 }
  0xd6   :  { %v498_v28 = vmul.f32 %v483_v22, %v302_v19  ;;  %v496_v37 = vmul.f32 %v478_v31, %v297_v11 }
  0xd7   :  { %v495_v29 = vadd.f32 %v492_v27, %v489_v26 }
  0xd9   :  { %v501_v30 = vadd.f32 %v498_v28, %v495_v29 }
  0xdb   :  { %504 = vst [vmem:[#allocation10 + $0x10] sm:$0xff] %v501_v30 }
  0xdc   :  { %v460_v32 = vpop.f32.mrf.mxu2  ;;  %v467_v33 = vpop.f32.mrf.mxu3 }
  0xdd   :  { %v490_v35 = vmul.f32 %v460_v32, %v279_v10  ;;  %v485_v36 = vpop.f32.mrf.mxu1  ;;  %v480_v40 = vpop.f32.mrf.mxu0 }
  0xde   :  { %v497_v44 = vmul.f32 %v480_v40, %v299_v15 }
  0xdf   :  { %v493_v38 = vadd.f32 %v490_v35, %v487_v34 }
  0xe1   :  { %v499_v39 = vadd.f32 %v496_v37, %v493_v38 }
  0xe3   :  { %502 = vst [vmem:[#allocation10] sm:$0xff] %v499_v39 }
  0xe4   :  { %v462_v41 = vpop.f32.mrf.mxu2 }
  0xe5   :  { %v491_v43 = vmul.f32 %v462_v41, %v281_v14 }
  0xe7   :  { %v494_v45 = vadd.f32 %v491_v43, %v488_v42 }
  0xe9   :  { %v500_v46 = vadd.f32 %v497_v44, %v494_v45 }
  0xeb   :  { %503 = vst [vmem:[#allocation10 + $0x8] sm:$0xff] %v500_v46 }
  0xec   :  { %517 = dma.vmem_to_hbm [thread:$0]  %s510_s3, 384, %s512_s13, [#allocation4], %s892_s23, %s892_s23, %s893_s24  }
  0xed   :  { %889 = dma.done.wait [#allocation4], 384  }
  0xee   :  { %890 = vsyncadd [#allocation4], 4294966912 }
  0xef   :  { %522 = vsyncpa [#allocation3], 1 }
  0xf0   :  { %523 = vsyncpa [#allocation6], 1 }
  0xf1   :  { %524 = vsyncpa [#allocation9], 1 }
  0xf2   :  { %525 = vsyncpa [#allocation4], 1 }

</bundles_post_ra>
